<compile_context>
chip_gen: v5e
topology: v5e:2x2
jax: 0.10.0
libtpu: 0.0.40
codegen_flags: <defaults>
</compile_context>

<pallas_src>
import math

import jax
import jax.numpy as jnp
from jax.experimental import pallas as pl
from jax.experimental.pallas import tpu as pltpu


def _ewp_kernel(w_ref, x_ref, o_ref):
    # w_ref: (1, L) pre-softmaxed, pre-tiled weight row (f32).
    # x_ref / o_ref: (TM, L) lane-dense tile of packed input rows.
    # Product in f32 (matches PyTorch's f32 softmax math), cast at the store.
    o_ref[...] = (x_ref[...] * w_ref[...]).astype(o_ref.dtype)


def elementwise_product(x, params, *, max_tile_rows=2048,
                        per_buffer_vmem_bytes=4 * 1024 * 1024):
    """x: (..., D) array; params: (D,) raw (pre-softmax) parameters."""
    D = params.shape[0]
    orig_shape = x.shape

    # softmax over the embedding axis, computed once (matches F.softmax(dim=0)).
    w = jax.nn.softmax(params.astype(jnp.float32), axis=0)

    x2 = x.reshape(-1, D)
    M = x2.shape[0]

    # --- lane-dense packing: fold `pack` logical rows into one physical row so
    # the last dim is a multiple of 128. Skip entirely when D already is one.
    if D % 128 == 0:
        pack = 1
    else:
        pack = 128 // math.gcd(D, 128)
    lane = D * pack

    rows = M // pack              # rows processed by the kernel
    main_M = rows * pack
    tail = M - main_M             # <= pack - 1 leftover logical rows

    if rows == 0:
        # Tiny input: no full packed row; do it directly in the wrapper.
        out = (x2.astype(jnp.float32) * w).astype(x.dtype)
        return out.reshape(orig_shape)

    # --- tile sizing: VMEM budget, dtype-native sublane alignment, and a cap
    # so the grid has >= ~4 steps (pipelining; shards across v7x's two TCs).
    itemsize = jnp.dtype(x.dtype).itemsize
    sub = 32 // itemsize          # 8 for f32, 16 for bf16, 32 for int8/fp8
    budget_rows = max(sub, (per_buffer_vmem_bytes // (lane * itemsize)) // sub * sub)
    tile_rows = min(max_tile_rows, budget_rows)
    if rows <= sub:
        tile_rows = rows          # single full-extent block (allowed by Pallas)
    else:
        quarter = max(sub, (rows // 4) // sub * sub)
        tile_rows = max(sub, (min(tile_rows, quarter) // sub) * sub)

    x_main = x2 if tail == 0 else x2[:main_M]
    xp = x_main.reshape(rows, lane)            # contiguous -> free reshape
    wp = jnp.tile(w, pack).reshape(1, lane)    # weight row, replicated `pack` times

    grid = (pl.cdiv(rows, tile_rows),)         # partial last block masked by Pallas
    out_main = pl.pallas_call(
        _ewp_kernel,
        out_shape=jax.ShapeDtypeStruct((rows, lane), x.dtype),
        grid_spec=pltpu.PrefetchScalarGridSpec(
            num_scalar_prefetch=0,
            grid=grid,
            in_specs=[
                pl.BlockSpec((1, lane), lambda i: (0, 0)),          # weights (resident)
                pl.BlockSpec((tile_rows, lane), lambda i: (i, 0)),  # x tile
            ],
            out_specs=pl.BlockSpec((tile_rows, lane), lambda i: (i, 0)),
        ),
        compiler_params=pltpu.CompilerParams(
            dimension_semantics=("parallel",),
            vmem_limit_bytes=32 * 1024 * 1024,   # well under v7x's 64 MiB VMEM
        ),
    )(wp, xp)

    out = out_main.reshape(main_M, D)
    if tail:
        # Handle the <= pack-1 leftover rows directly; only this uncommon
        # ragged case pays the concatenate pass (no pad / output slice ever).
        out_tail = (x2[main_M:].astype(jnp.float32) * w).astype(x.dtype)
        out = jnp.concatenate([out, out_tail], axis=0)
    return out.reshape(orig_shape)


if __name__ == "__main__":
    # Module config: embedding_dim = 32; input x of shape (batch, seq, embedding_dim)
    embedding_dim = 32
    batch, seq = 2, 8

    key = jax.random.PRNGKey(0)
    x = jax.random.normal(key, (batch, seq, embedding_dim), dtype=jnp.float32)

    # nn.Parameter(torch.ones(embedding_dim)) -> deterministic ones init
    params = jnp.ones((embedding_dim,), dtype=jnp.float32)

    out = elementwise_product(x, params)
    out = jax.block_until_ready(out)
    ref = x * jax.nn.softmax(params, axis=0)
    assert jnp.allclose(out, ref, atol=1e-6), "mismatch vs reference"

    # ragged leading dims: exercises the wrapper-side tail path (M % pack != 0)
    x2 = jax.random.normal(jax.random.PRNGKey(1), (3, 5, embedding_dim),
                           dtype=jnp.float32)
    p2 = jax.random.normal(jax.random.PRNGKey(2), (embedding_dim,),
                           dtype=jnp.float32)
    out2 = jax.block_until_ready(elementwise_product(x2, p2))
    ref2 = x2 * jax.nn.softmax(p2, axis=0)
    assert jnp.allclose(out2, ref2, atol=1e-6), "mismatch vs reference (ragged)"

    # multi-step grid with a partial last block: exercises Pallas masked writes
    x3 = jax.random.normal(jax.random.PRNGKey(3), (4, 25, embedding_dim),
                           dtype=jnp.float32)
    p3 = jax.random.normal(jax.random.PRNGKey(4), (embedding_dim,),
                           dtype=jnp.float32)
    out3 = jax.block_until_ready(elementwise_product(x3, p3))
    ref3 = x3 * jax.nn.softmax(p3, axis=0)
    assert jnp.allclose(out3, ref3, atol=1e-6), "mismatch vs reference (partial block)"

    # TODO(synk): for sub-f32 inputs PyTorch would promote the output to f32
    # (f32 softmax * low-precision x); here the product is done in f32 but the
    # output keeps x.dtype.
    print("KERNEL_OK")
</pallas_src>

<mosaic_0001>
module attributes {stable_mosaic.version = 11 : i64} {
  func.func @_ewp_kernel(%arg0: i32, %arg1: memref<1x128xf32, #tpu.memory_space<vmem>>, %arg2: memref<4x128xf32, #tpu.memory_space<vmem>>, %arg3: memref<4x128xf32, #tpu.memory_space<vmem>>) attributes {dimension_semantics = [#tpu.dimension_semantics<parallel>], iteration_bounds = array<i64: 1>, scalar_prefetch = 0 : i64, scratch_operands = 0 : i64, tpu.core_type = #tpu.core_type<tc>, window_params = [{pipeline_mode = #tpu.pipeline_mode<synchronous>, transform_indices = @transform_0, window_bounds = array<i64: 1, 128>}, {transform_indices = @transform_1, window_bounds = array<i64: 4, 128>}, {transform_indices = @transform_2, window_bounds = array<i64: 4, 128>}]} {
    %c0 = arith.constant 0 : index
    %c0_0 = arith.constant 0 : index
    %0 = vector.load %arg2[%c0, %c0_0] : memref<4x128xf32, #tpu.memory_space<vmem>>, vector<4x128xf32>
    %c0_1 = arith.constant 0 : index
    %c0_2 = arith.constant 0 : index
    %1 = vector.load %arg1[%c0_1, %c0_2] : memref<1x128xf32, #tpu.memory_space<vmem>>, vector<1x128xf32>
    %2 = vector.broadcast %1 : vector<1x128xf32> to vector<4x128xf32>
    %3 = arith.mulf %0, %2 : vector<4x128xf32>
    %c0_3 = arith.constant 0 : index
    %c0_4 = arith.constant 0 : index
    %4 = vector.load %arg3[%c0_3, %c0_4] : memref<4x128xf32, #tpu.memory_space<vmem>>, vector<4x128xf32>
    tpu.vector_store %arg3[%c0_3, %c0_4], %3 {strides = array<i32>} : memref<4x128xf32, #tpu.memory_space<vmem>>, vector<4x128xf32>,
    return
  }
  func.func @transform_0(%arg0: i32) -> (i32, i32) {
    %c0_i32 = arith.constant 0 : i32
    %c0_i32_0 = arith.constant 0 : i32
    %c0_i32_1 = arith.constant 0 : i32
    return %c0_i32, %c0_i32_0 : i32, i32
  }
  func.func @transform_1(%arg0: i32) -> (i32, i32) {
    %c0_i32 = arith.constant 0 : i32
    %c0_i32_0 = arith.constant 0 : i32
    return %arg0, %c0_i32 : i32, i32
  }
  func.func @transform_2(%arg0: i32) -> (i32, i32) {
    %c0_i32 = arith.constant 0 : i32
    %c0_i32_0 = arith.constant 0 : i32
    return %arg0, %c0_i32 : i32, i32
  }
}

</mosaic_0001>

<bundles_post_ra>
// kernel: tpu_custom_call.1
= control target key start
LH: loop header
LB: loop body
LE: loop exit
PB: predicated region body
PF: predicated region fallthrough
CT: control target
= control target key end

     0   :  { %7 = vsyncpa [#allocation3], 0  ;;  %s174_s0 = inlined_call_operand.hbm [shape: f32[1,128], index: 0, kind: input, shape index: {}]   ;;  %s175_s1 = inlined_call_operand.hbm [shape: f32[4,128], index: 1, kind: input, shape index: {}]   ;;  %s176_s2 = inlined_call_operand.hbm [shape: f32[4,128], index: 2, kind: output, shape index: {}]  }
   0x1   :  { %8 = vsyncpa [#allocation6], 0 }
   0x2   :  { %9 = vsyncpa [#allocation4], 0  ;;  %s15_s11 = sshll.u32 %s174_s0, 4  ;;  %s147_s12 = smov [#allocation2]   ;;  %s16_s11 = int_to_ptr.hbm [resolvable:$true] %s15_s11 }
   0x3   :  { %s17_s13 = sshll.u32 %s147_s12, 4  ;;  %s26_s16 = sshll.u32 %s175_s1, 4  ;;  %s18_s13 = int_to_ptr.vmem [resolvable:$true] %s17_s13  ;;  %s27_s16 = int_to_ptr.hbm [resolvable:$true] %s26_s16 }
   0x4   :  { %20 = dma.hbm_to_vmem [thread:$0]  %s16_s11, 16, %s18_s13, [#allocation3]  }
   0x5   :  { %s148_s17 = smov [#allocation5]  }
   0x6   :  { %s28_s18 = sshll.u32 %s148_s17, 4  ;;  %s29_s18 = int_to_ptr.vmem [resolvable:$true] %s28_s18 }
   0x7   :  { %31 = dma.hbm_to_vmem [thread:$0]  %s27_s16, 64, %s29_s18, [#allocation6]  }
   0x8   :  { %141 = dma.done.wait [#allocation3], 16  }
   0x9   :  { %142 = vsyncadd [#allocation3], 4294967280 }
   0xa   :  { %143 = dma.done.wait [#allocation6], 64  }
   0xb   :  { %144 = vsyncadd [#allocation6], 4294967232  ;;  %s149_s19 = smov [#allocation7]   ;;  %s54_s22 = sshll.u32 %s176_s2, 4  ;;  %v40_v0 = vld [vmem:[#allocation5] sm:$0xf]  ;;  %s55_s22 = int_to_ptr.hbm [resolvable:$true] %s54_s22 }
   0xc   :  { %s52_s0 = sshll.u32 %s149_s19, 4  ;;  %v68_v1 = vld [vmem:[#allocation2] ss:$0 sm:$0xff]  ;;  %s53_s0 = int_to_ptr.vmem [resolvable:$true] %s52_s0 }
   0xd   :  { %v45_v2 = vmul.f32 %v68_v1, %v40_v0 }
   0xf   :  { %46 = vst [vmem:[#allocation7] sm:$0xf] %v45_v2 }
  0x10   :  { %57 = dma.vmem_to_hbm [thread:$0]  %s53_s0, 64, %s55_s22, [#allocation4]  }
  0x11   :  { %145 = dma.done.wait [#allocation4], 64  }
  0x12   :  { %146 = vsyncadd [#allocation4], 4294967232 }
  0x13   :  { %62 = vsyncpa [#allocation3], 1 }
  0x14   :  { %63 = vsyncpa [#allocation6], 1 }
  0x15   :  { %64 = vsyncpa [#allocation4], 1 }

</bundles_post_ra>
